<compile_context>
chip_gen: v7x
topology: tpu7x:2x2x1
jax: 0.10.0
libtpu: 0.0.40
codegen_flags: <defaults>
</compile_context>

<pallas_src>
import jax
import jax.numpy as jnp
from jax.experimental import pallas as pl
from jax.experimental.pallas import tpu as pltpu


TILE_P = 512  # lane tile (multiple of 128); keeps VMEM tiny and scales with P


def _fused_kernel(x_ref, m_ref, w1_ref, b1_ref, w2_ref, b2_ref, w3_ref, b3_ref,
                  o_ref):
    # x_ref: (Cin, T)  pre-padded input, spatial flattened + lane-padded
    # m_ref: (1,  T)   1.0 where the pixel exists in the conv1 output grid
    # o_ref: (32, T)
    x = x_ref[...]
    m = m_ref[...]
    w1 = w1_ref[...]                     # (16, 3)
    b1 = b1_ref[...]                     # (16, 1)

    # conv1 (1x1, Cin=3): three broadcast FMAs on the VPU (K=3 wastes the MXU).
    v1 = (w1[:, 0:1] * x[0:1, :]
          + w1[:, 1:2] * x[1:2, :]
          + w1[:, 2:3] * x[2:3, :]
          + b1)                          # (16, T)
    v2 = jnp.clip(v1, -1.0, 1.0)         # hardtanh
    v3 = (v1 * v2) * m                   # zero ring == padding=1 before conv2

    # conv2 (1x1): (32,16) @ (16,T) on the MXU
    v4 = jnp.dot(w2_ref[...], v3, preferred_element_type=jnp.float32) + b2_ref[...]
    v5 = jnp.clip(v4, -1.0, 1.0)
    v6 = v4 * v5
    v7 = v5 * v6

    # conv3 (1x1), interior crop of the padded conv == unpadded 1x1 conv on v7
    v8 = jnp.dot(w3_ref[...], v7, preferred_element_type=jnp.float32) + b3_ref[...]
    o_ref[...] = v8 * v7                 # lane-dense store, (32, T)


def model_forward(x_nchw, params):
    w1, b1, w2, b2, w3, b3 = params      # w: (Cout, Cin), b: (Cout,)
    N, Cin, H, W = x_nchw.shape
    Hp, Wp = H + 4, W + 4                # output spatial grid (conv1+conv2 pads)
    P = Hp * Wp
    n_pt = -(-P // TILE_P)               # ceil div
    P_pad = n_pt * TILE_P

    x = x_nchw.astype(jnp.float32)
    xpad = jnp.pad(x, ((0, 0), (0, 0), (2, 2), (2, 2)))        # NCHW spatial pad
    xflat = xpad.reshape(N, Cin, P)
    xflat = jnp.pad(xflat, ((0, 0), (0, 0), (0, P_pad - P)))   # lane pad

    # mask = 1 where the pixel exists in the conv1 output grid (H+2, W+2),
    # i.e. everywhere except the outermost 1-pixel ring of the (Hp, Wp) grid.
    ii = jnp.arange(Hp)[:, None]
    jj = jnp.arange(Wp)[None, :]
    mask = ((ii >= 1) & (ii < Hp - 1) & (jj >= 1) & (jj < Wp - 1))
    mask = mask.astype(jnp.float32).reshape(1, P)
    mask = jnp.pad(mask, ((0, 0), (0, P_pad - P)))             # (1, P_pad)

    out = pl.pallas_call(
        _fused_kernel,
        out_shape=jax.ShapeDtypeStruct((N, 32, P_pad), jnp.float32),
        grid=(N, n_pt),
        in_specs=[
            pl.BlockSpec((None, Cin, TILE_P), lambda n, t: (n, 0, t)),
            pl.BlockSpec((1, TILE_P), lambda n, t: (0, t)),
            pl.BlockSpec((16, Cin), lambda n, t: (0, 0)),
            pl.BlockSpec((16, 1), lambda n, t: (0, 0)),
            pl.BlockSpec((32, 16), lambda n, t: (0, 0)),
            pl.BlockSpec((32, 1), lambda n, t: (0, 0)),
            pl.BlockSpec((32, 32), lambda n, t: (0, 0)),
            pl.BlockSpec((32, 1), lambda n, t: (0, 0)),
        ],
        out_specs=pl.BlockSpec((None, 32, TILE_P), lambda n, t: (n, 0, t)),
        compiler_params=pltpu.CompilerParams(
            dimension_semantics=("parallel", "parallel")),
    )(xflat, mask,
      w1, b1.reshape(-1, 1),
      w2, b2.reshape(-1, 1),
      w3, b3.reshape(-1, 1))

    # (N, 32, P_pad) -> crop lane padding -> NCHW, no transpose needed.
    return out[:, :, :P].reshape(N, 32, Hp, Wp)


def ref_forward(x_nchw, params):
    """Pure-JAX reference with explicit padded 1x1 convs (crop interpretation)."""
    w1, b1, w2, b2, w3, b3 = params      # w: (Cout, Cin)
    x = jnp.transpose(x_nchw, (0, 2, 3, 1)).astype(jnp.float32)

    def conv1x1_pad(t, w, b):
        tp = jnp.pad(t, ((0, 0), (1, 1), (1, 1), (0, 0)))
        return jnp.einsum('nhwc,oc->nhwo', tp, w) + b

    v1 = conv1x1_pad(x, w1, b1)
    v2 = jnp.clip(v1, -1.0, 1.0)
    v3 = v1 * v2
    v4 = conv1x1_pad(v3, w2, b2)
    v5 = jnp.clip(v4, -1.0, 1.0)
    v6 = v4 * v5
    v7 = v5 * v6
    v8 = jnp.einsum('nhwc,oc->nhwo', v7, w3) + b3   # padded conv3 interior crop
    v9 = v8 * v7
    return jnp.transpose(v9, (0, 3, 1, 2))


def init_params(key):
    # Conv2d 1x1 weights as (Cout, Cin) matrices; uniform(+-1/sqrt(fan_in)).
    ks = jax.random.split(key, 6)

    def u(k, shape, fan_in):
        bound = 1.0 / jnp.sqrt(float(fan_in))
        return jax.random.uniform(k, shape, jnp.float32, -bound, bound)

    w1 = u(ks[0], (16, 3), 3);    b1 = u(ks[1], (16,), 3)
    w2 = u(ks[2], (32, 16), 16);  b2 = u(ks[3], (32,), 16)
    w3 = u(ks[4], (32, 32), 32);  b3 = u(ks[5], (32,), 32)
    return (w1, b1, w2, b2, w3, b3)


if __name__ == "__main__":
    key = jax.random.PRNGKey(0)
    k_x, k_p = jax.random.split(key)
    x = jax.random.normal(k_x, (2, 3, 16, 16), jnp.float32)   # small NCHW input
    params = init_params(k_p)

    out = model_forward(x, params)
    out = jax.block_until_ready(out)

    ref = ref_forward(x, params)
    assert out.shape == (2, 32, 20, 20), out.shape
    assert jnp.allclose(out, ref, atol=2e-5, rtol=1e-5), \
        float(jnp.max(jnp.abs(out - ref)))
    print("KERNEL_OK")
</pallas_src>

<mosaic_0001>
module attributes {stable_mosaic.version = 11 : i64} {
  func.func @_fused_kernel(%arg0: i32, %arg1: i32, %arg2: memref<1x3x512xf32, #tpu.memory_space<vmem>>, %arg3: memref<1x512xf32, #tpu.memory_space<vmem>>, %arg4: memref<16x3xf32, #tpu.memory_space<vmem>>, %arg5: memref<16x1xf32, #tpu.memory_space<vmem>>, %arg6: memref<32x16xf32, #tpu.memory_space<vmem>>, %arg7: memref<32x1xf32, #tpu.memory_space<vmem>>, %arg8: memref<32x32xf32, #tpu.memory_space<vmem>>, %arg9: memref<32x1xf32, #tpu.memory_space<vmem>>, %arg10: memref<1x32x512xf32, #tpu.memory_space<vmem>>) attributes {dimension_semantics = [#tpu.dimension_semantics<parallel>, #tpu.dimension_semantics<parallel>], iteration_bounds = array<i64: 2, 1>, scalar_prefetch = 0 : i64, scratch_operands = 0 : i64, tpu.core_type = #tpu.core_type<tc>, window_params = [{transform_indices = @transform_0, window_bounds = array<i64: 1, 3, 512>}, {transform_indices = @transform_1, window_bounds = array<i64: 1, 512>}, {pipeline_mode = #tpu.pipeline_mode<synchronous>, transform_indices = @transform_2, window_bounds = array<i64: 16, 3>}, {pipeline_mode = #tpu.pipeline_mode<synchronous>, transform_indices = @transform_3, window_bounds = array<i64: 16, 1>}, {pipeline_mode = #tpu.pipeline_mode<synchronous>, transform_indices = @transform_4, window_bounds = array<i64: 32, 16>}, {pipeline_mode = #tpu.pipeline_mode<synchronous>, transform_indices = @transform_5, window_bounds = array<i64: 32, 1>}, {pipeline_mode = #tpu.pipeline_mode<synchronous>, transform_indices = @transform_6, window_bounds = array<i64: 32, 32>}, {pipeline_mode = #tpu.pipeline_mode<synchronous>, transform_indices = @transform_7, window_bounds = array<i64: 32, 1>}, {transform_indices = @transform_8, window_bounds = array<i64: 1, 32, 512>}]} {
    %c0 = arith.constant 0 : index
    %c0_0 = arith.constant 0 : index
    %c0_1 = arith.constant 0 : index
    %0 = vector.load %arg2[%c0, %c0_0, %c0_1] : memref<1x3x512xf32, #tpu.memory_space<vmem>>, vector<1x3x512xf32>
    %1 = vector.shape_cast %0 : vector<1x3x512xf32> to vector<3x512xf32>
    %c0_2 = arith.constant 0 : index
    %c0_3 = arith.constant 0 : index
    %2 = vector.load %arg3[%c0_2, %c0_3] : memref<1x512xf32, #tpu.memory_space<vmem>>, vector<1x512xf32>
    %c0_4 = arith.constant 0 : index
    %c0_5 = arith.constant 0 : index
    %3 = vector.load %arg4[%c0_4, %c0_5] : memref<16x3xf32, #tpu.memory_space<vmem>>, vector<16x3xf32>
    %c0_6 = arith.constant 0 : index
    %c0_7 = arith.constant 0 : index
    %4 = vector.load %arg5[%c0_6, %c0_7] : memref<16x1xf32, #tpu.memory_space<vmem>>, vector<16x1xf32>
    %5 = vector.extract_strided_slice %3 {offsets = [0, 0], sizes = [16, 1], strides = [1, 1]} : vector<16x3xf32> to vector<16x1xf32>
    %6 = vector.extract_strided_slice %1 {offsets = [0, 0], sizes = [1, 512], strides = [1, 1]} : vector<3x512xf32> to vector<1x512xf32>
    %7 = vector.broadcast %5 : vector<16x1xf32> to vector<16x512xf32>
    %8 = vector.broadcast %6 : vector<1x512xf32> to vector<16x512xf32>
    %9 = arith.mulf %7, %8 : vector<16x512xf32>
    %10 = vector.extract_strided_slice %3 {offsets = [0, 1], sizes = [16, 1], strides = [1, 1]} : vector<16x3xf32> to vector<16x1xf32>
    %11 = vector.extract_strided_slice %1 {offsets = [1, 0], sizes = [1, 512], strides = [1, 1]} : vector<3x512xf32> to vector<1x512xf32>
    %12 = vector.broadcast %10 : vector<16x1xf32> to vector<16x512xf32>
    %13 = vector.broadcast %11 : vector<1x512xf32> to vector<16x512xf32>
    %14 = arith.mulf %12, %13 : vector<16x512xf32>
    %15 = arith.addf %9, %14 : vector<16x512xf32>
    %16 = vector.extract_strided_slice %3 {offsets = [0, 2], sizes = [16, 1], strides = [1, 1]} : vector<16x3xf32> to vector<16x1xf32>
    %17 = vector.extract_strided_slice %1 {offsets = [2, 0], sizes = [1, 512], strides = [1, 1]} : vector<3x512xf32> to vector<1x512xf32>
    %18 = vector.broadcast %16 : vector<16x1xf32> to vector<16x512xf32>
    %19 = vector.broadcast %17 : vector<1x512xf32> to vector<16x512xf32>
    %20 = arith.mulf %18, %19 : vector<16x512xf32>
    %21 = arith.addf %15, %20 : vector<16x512xf32>
    %22 = vector.broadcast %4 : vector<16x1xf32> to vector<16x512xf32>
    %23 = arith.addf %21, %22 : vector<16x512xf32>
    %cst = arith.constant -1.000000e+00 : f32
    %cst_8 = arith.constant 1.000000e+00 : f32
    %24 = vector.broadcast %cst : f32 to vector<16x512xf32>
    %25 = arith.maximumf %24, %23 : vector<16x512xf32>
    %26 = vector.broadcast %cst_8 : f32 to vector<16x512xf32>
    %27 = arith.minimumf %26, %25 : vector<16x512xf32>
    %28 = arith.mulf %23, %27 : vector<16x512xf32>
    %29 = vector.broadcast %2 : vector<1x512xf32> to vector<16x512xf32>
    %30 = arith.mulf %28, %29 : vector<16x512xf32>
    %c0_9 = arith.constant 0 : index
    %c0_10 = arith.constant 0 : index
    %31 = vector.load %arg6[%c0_9, %c0_10] : memref<32x16xf32, #tpu.memory_space<vmem>>, vector<32x16xf32>
    %cst_11 = arith.constant dense<0.000000e+00> : vector<32x512xf32>
    %32 = tpu.matmul %31, %30, %cst_11 {dimension_numbers = #tpu.dot_dimension_numbers<[1], [0], [0], [1], [0, 0, 1, 1], [], []>} : vector<32x16xf32>, vector<16x512xf32>, vector<32x512xf32> -> vector<32x512xf32>
    %c0_12 = arith.constant 0 : index
    %c0_13 = arith.constant 0 : index
    %33 = vector.load %arg7[%c0_12, %c0_13] : memref<32x1xf32, #tpu.memory_space<vmem>>, vector<32x1xf32>
    %34 = vector.broadcast %33 : vector<32x1xf32> to vector<32x512xf32>
    %35 = arith.addf %32, %34 : vector<32x512xf32>
    %cst_14 = arith.constant -1.000000e+00 : f32
    %cst_15 = arith.constant 1.000000e+00 : f32
    %36 = vector.broadcast %cst_14 : f32 to vector<32x512xf32>
    %37 = arith.maximumf %36, %35 : vector<32x512xf32>
    %38 = vector.broadcast %cst_15 : f32 to vector<32x512xf32>
    %39 = arith.minimumf %38, %37 : vector<32x512xf32>
    %40 = arith.mulf %35, %39 : vector<32x512xf32>
    %41 = arith.mulf %39, %40 : vector<32x512xf32>
    %c0_16 = arith.constant 0 : index
    %c0_17 = arith.constant 0 : index
    %42 = vector.load %arg8[%c0_16, %c0_17] : memref<32x32xf32, #tpu.memory_space<vmem>>, vector<32x32xf32>
    %cst_18 = arith.constant dense<0.000000e+00> : vector<32x512xf32>
    %43 = tpu.matmul %42, %41, %cst_18 {dimension_numbers = #tpu.dot_dimension_numbers<[1], [0], [0], [1], [0, 0, 1, 1], [], []>} : vector<32x32xf32>, vector<32x512xf32>, vector<32x512xf32> -> vector<32x512xf32>
    %c0_19 = arith.constant 0 : index
    %c0_20 = arith.constant 0 : index
    %44 = vector.load %arg9[%c0_19, %c0_20] : memref<32x1xf32, #tpu.memory_space<vmem>>, vector<32x1xf32>
    %45 = vector.broadcast %44 : vector<32x1xf32> to vector<32x512xf32>
    %46 = arith.addf %43, %45 : vector<32x512xf32>
    %47 = arith.mulf %46, %41 : vector<32x512xf32>
    %c0_21 = arith.constant 0 : index
    %c0_22 = arith.constant 0 : index
    %c0_23 = arith.constant 0 : index
    %48 = vector.load %arg10[%c0_21, %c0_22, %c0_23] : memref<1x32x512xf32, #tpu.memory_space<vmem>>, vector<1x32x512xf32>
    %49 = vector.shape_cast %48 : vector<1x32x512xf32> to vector<32x512xf32>
    %50 = vector.shape_cast %47 : vector<32x512xf32> to vector<1x32x512xf32>
    tpu.vector_store %arg10[%c0_21, %c0_22, %c0_23], %50 {strides = array<i32>} : memref<1x32x512xf32, #tpu.memory_space<vmem>>, vector<1x32x512xf32>,
    return
  }
  func.func @transform_0(%arg0: i32, %arg1: i32) -> (i32, i32, i32) {
    %c0_i32 = arith.constant 0 : i32
    %c0_i32_0 = arith.constant 0 : i32
    return %arg0, %c0_i32, %arg1 : i32, i32, i32
  }
  func.func @transform_1(%arg0: i32, %arg1: i32) -> (i32, i32) {
    %c0_i32 = arith.constant 0 : i32
    %c0_i32_0 = arith.constant 0 : i32
    return %c0_i32, %arg1 : i32, i32
  }
  func.func @transform_2(%arg0: i32, %arg1: i32) -> (i32, i32) {
    %c0_i32 = arith.constant 0 : i32
    %c0_i32_0 = arith.constant 0 : i32
    %c0_i32_1 = arith.constant 0 : i32
    return %c0_i32, %c0_i32_0 : i32, i32
  }
  func.func @transform_3(%arg0: i32, %arg1: i32) -> (i32, i32) {
    %c0_i32 = arith.constant 0 : i32
    %c0_i32_0 = arith.constant 0 : i32
    %c0_i32_1 = arith.constant 0 : i32
    return %c0_i32, %c0_i32_0 : i32, i32
  }
  func.func @transform_4(%arg0: i32, %arg1: i32) -> (i32, i32) {
    %c0_i32 = arith.constant 0 : i32
    %c0_i32_0 = arith.constant 0 : i32
    %c0_i32_1 = arith.constant 0 : i32
    return %c0_i32, %c0_i32_0 : i32, i32
  }
  func.func @transform_5(%arg0: i32, %arg1: i32) -> (i32, i32) {
    %c0_i32 = arith.constant 0 : i32
    %c0_i32_0 = arith.constant 0 : i32
    %c0_i32_1 = arith.constant 0 : i32
    return %c0_i32, %c0_i32_0 : i32, i32
  }
  func.func @transform_6(%arg0: i32, %arg1: i32) -> (i32, i32) {
    %c0_i32 = arith.constant 0 : i32
    %c0_i32_0 = arith.constant 0 : i32
    %c0_i32_1 = arith.constant 0 : i32
    return %c0_i32, %c0_i32_0 : i32, i32
  }
  func.func @transform_7(%arg0: i32, %arg1: i32) -> (i32, i32) {
    %c0_i32 = arith.constant 0 : i32
    %c0_i32_0 = arith.constant 0 : i32
    %c0_i32_1 = arith.constant 0 : i32
    return %c0_i32, %c0_i32_0 : i32, i32
  }
  func.func @transform_8(%arg0: i32, %arg1: i32) -> (i32, i32, i32) {
    %c0_i32 = arith.constant 0 : i32
    %c0_i32_0 = arith.constant 0 : i32
    return %arg0, %c0_i32, %arg1 : i32, i32, i32
  }
}

</mosaic_0001>

<bundles_post_ra>
// kernel: tpu_custom_call.1
= control target key start
LH: loop header
LB: loop body
LE: loop exit
PB: predicated region body
PF: predicated region fallthrough
CT: control target
= control target key end

     0   :  { %13 = vsyncpa [#allocation3], 0  ;;  %s1861_s0 = inlined_call_operand.vmem [shape: f32[2,3,512], index: 0, kind: input, shape index: {}]   ;;  %s1862_s1 = inlined_call_operand.vmem [shape: f32[1,512], index: 1, kind: input, shape index: {}]   ;;  %s1863_s2 = inlined_call_operand.vmem [shape: f32[16,3], index: 2, kind: input, shape index: {}]   ;;  %s1864_s3 = inlined_call_operand.vmem [shape: f32[16,1], index: 3, kind: input, shape index: {}]   ;;  %s1865_s4 = inlined_call_operand.vmem [shape: f32[32,16], index: 4, kind: input, shape index: {}]   ;;  %s1866_s5 = inlined_call_operand.vmem [shape: f32[32,1], index: 5, kind: input, shape index: {}]   ;;  %s1867_s6 = inlined_call_operand.vmem [shape: f32[32,32], index: 6, kind: input, shape index: {}]   ;;  %s1868_s7 = inlined_call_operand.vmem [shape: f32[32,1], index: 7, kind: input, shape index: {}]   ;;  %s1869_s8 = inlined_call_operand.hbm [shape: f32[2,32,512], index: 8, kind: output, shape index: {}]  }
   0x1   :  { %15 = vsyncpa [#allocation3 + $0x1], 0  ;;  %s1528_s27 = smov 0   ;;  %s1530_s28 = smov 0  }
   0x2   :  { %s1532_s29 = smov 0   ;;  %s1534_s30 = smov 0  }
   0x3   :  { %s1536_s9 = smov 0   ;;  %s1538_s10 = smov 0  }
   0x4 LB: > { %s1249_s11 = sadd.s32 4294967295, %s1474_s10   ;;  %s1250_s12 = sadd.s32 4294967294, %s1474_s10   ;;  %s1474_s10 = sphi %s1538_s10, %s21_s10   ;;  %s1470_s9 = sphi %s1536_s9, %s1876_s9   ;;  %s1466_s30 = sphi %s1534_s30, %s1875_s30   ;;  %s1462_s29 = sphi %s1532_s29, %s1874_s29   ;;  %s1458_s28 = sphi %s1530_s28, %s1873_s28   ;;  %s1454_s27 = sphi %s1528_s27, %s1872_s27  }
   0x5   : > { %s33_s13 = sadd.s32 1, %s1470_s9  ;;  %s222_s14 = sadd.s32 1, %s1462_s29 }
   0x6   : > { %p35_p0 = scmp.ge.s32.totalorder %s33_s13, 2  ;;  %p232_p1 = scmp.ne.s32.totalorder %s1462_s29, %s1458_s28 }
   0x7   : > { %p233_p2 = scmp.eq.s32.totalorder %s1249_s11, 1  ;;  %p238_p3 = scmp.ne.s32.totalorder %s1458_s28, %s1454_s27 }
   0x8   : > { %s1878_s13 = smov (%p35_p0, %s33_s13), 0  ;;  %p239_p5 = scmp.eq.s32.totalorder %s1250_s12, 1 }
   0x9   : > { %p1568_p4 = por %p233_p2, %p232_p1  ;;  %s217_s16 = ssub.s32 %s1470_s9, %s1878_s13 }
   0xa   : > { %p1254_p6 = scmp.ge.s32.totalorder %s1474_s10, 1  ;;  %p220_p7 = scmp.eq.s32.totalorder %s217_s16, 0 }
   0xb   : > { %p1575_p8 = por %p239_p5, %p238_p3  ;;  %p296_p9 = scmp.lt.s32.totalorder %s1474_s10, 3 }
   0xc   : > { %s1581_s18 = scalar_select %p220_p7, %s1462_s29, %s222_s14  }
   0xd   : > { %p297_p10 = pnand %p1254_p6, %p296_p9 }
   0xe   : > { %v357_v0 = vld [vmem:[%s1863_s2] sm:$0xff] (!%p297_p10)  ;;  %v1476_v1 = vmov (!%p297_p10), 1   ;;  %v1477_v2 = vmov (!%p297_p10), 0   ;;  %v358_v3 = vld [vmem:[%s1863_s2 + $0x8] sm:$0xff] (!%p297_p10)  ;;  %v1478_v4 = vmov (!%p297_p10), 2   ;;  %v614_v8 = vld [vmem:[%s1866_s5 + $0x10] sm:$0xff] (!%p297_p10)  ;;  %v373_v16 = vlaneseq (!%p297_p10) }
   0xf   : > { %300 = sbr.rel (%p297_p10) target bundleno = 656 (0x290), region = 52  ;;  %1391 = vset.pattern.permute.xlu1 (!%p297_p10), %v1476_v1  ;;  %1390 = vset.pattern.permute.xlu0 (!%p297_p10), %v1477_v2  ;;  %v359_v5 = vld [vmem:[%s1864_s3] sm:$0xff] (!%p297_p10)  ;;  %v360_v6 = vld [vmem:[%s1864_s3 + $0x8] sm:$0xff] (!%p297_p10)  ;;  %v615_v11 = vld [vmem:[%s1866_s5 + $0x18] sm:$0xff] (!%p297_p10)  ;;  %v1479_v14 = vmov (!%p297_p10), 0.0   ;;  %p339_p11 = scmp.lt.s32.totalorder (!%p297_p10), %s1466_s30, 1 }
  0x10   : > { %418 = vperm.xlu1 (!%p297_p10), %1391, %v357_v0   ;;  %363 = vperm.xlu0 (!%p297_p10), %1390, %v357_v0   ;;  %v612_v7 = vld [vmem:[%s1866_s5] sm:$0xff] (!%p297_p10)  ;;  %v613_v9 = vld [vmem:[%s1866_s5 + $0x8] sm:$0xff] (!%p297_p10)  ;;  %v897_v12 = vld [vmem:[%s1868_s7 + $0x10] sm:$0xff] (!%p297_p10)  ;;  %v1623_v17 = vshrl.u32 (!%p297_p10), %v373_v16, 7  ;;  %vm636_vm0 = vcmask (!%p297_p10), 130048   ;;  %vm919_vm1 = vcmask (!%p297_p10), 261120  }
  0x11   : > { %v895_v10 = vld [vmem:[%s1868_s7] sm:$0xff] (!%p297_p10)  ;;  %v896_v13 = vld [vmem:[%s1868_s7 + $0x8] sm:$0xff] (!%p297_p10)  ;;  %713 = vmatprep.mubr.f32.mxu0 (!%p297_p10), %v1479_v14  ;;  %802 = vmatprep.mubr.f32.mxu1 (!%p297_p10), %v1479_v14  ;;  %v898_v15 = vld [vmem:[%s1868_s7 + $0x18] sm:$0xff] (!%p297_p10)  ;;  %s335_s16 = sand.u32 (!%p297_p10), 1, %s1458_s28   ;;  %s1304_s21 = sshll.u32 (!%p297_p10), %s1466_s30, 11 }
  0x12   : > { %v1629_v18 = vsub.s32 (!%p297_p10), 1, %v1623_v17  ;;  %v431_v19 = vsub.s32 (!%p297_p10), 5, %v1623_v17  ;;  %v1633_v22 = vsub.s32 (!%p297_p10), 0, %v1623_v17  ;;  %v379_v23 = vsub.s32 (!%p297_p10), 4, %v1623_v17  ;;  %s1803_s24 = scalar_lea.hbm (!%p297_p10), %s1869_s8, %s1304_s21  ;;  %s1815_s25 = scalar_lea.sflag (!%p297_p10), [#allocation3], %s335_s16 }
  0x13   : > { %v1637_v24 = vsub.s32 (!%p297_p10), 2, %v1623_v17  ;;  %v491_v25 = vsub.s32 (!%p297_p10), 6, %v1623_v17  ;;  %s1480_s11 = smov (!%p297_p10), [#allocation2]  }
  0x14   : > { %422 = vperm.xlu1 (!%p297_p10), %1391, %v358_v3   ;;  %368 = vperm.xlu0 (!%p297_p10), %1390, %v358_v3   ;;  %s1400_s12 = sshll.u32 (!%p297_p10), %s1480_s11, 4  ;;  %s1401_s12 = int_to_ptr.vmem [resolvable:$false] %s1400_s12 }
  0x15   : > { %s1402_s14 = scalar_lea.vmem (!%p297_p10), %s1401_s12, 4096 }
  0x16   : > { %s340_s19 = scalar_select %p339_p11, %s1466_s30, 1 }
  0x18   : > { %1393 = vset.pattern.permute.xlu1 %v1478_v4  ;;  %1392 = vset.pattern.permute.xlu0 %v1478_v4  ;;  %s1303_s20 = sshll.u32 %s340_s19, 4  ;;  %s1255_s19 = sshll.u32 %s335_s16, 7 }
  0x19   : > { %482 = vperm.xlu1 %1393, %v358_v3   ;;  %478 = vperm.xlu0 %1392, %v357_v0   ;;  %s346_s23 = scalar_lea.vmem %s1861_s0, %s1303_s20  ;;  %s1774_s20 = scalar_lea.vmem [#allocation2], %s1255_s19 }
  0x1a   : > { %v354_v20 = vld [vmem:[%s346_s23] sm:$0x77]  ;;  %v355_v21 = vld [vmem:[%s346_s23 + $0x8] sm:$0x77]  ;;  %s1158_s22 = sshll.u32 %s1774_s20, 4  ;;  %s1805_s22 = int_to_ptr.vmem [resolvable:$true] %s1158_s22 }
  0x1b   : > { %v428_v26 = vrot.slane %v354_v20, %v1629_v18  ;;  %v432_v27 = vrot.slane %v354_v20, %v431_v19  ;;  %v436_v28 = vrot.slane %v355_v21, %v1629_v18  ;;  %v440_v29 = vrot.slane %v355_v21, %v431_v19  ;;  %s1396_s26 = scalar_lea.vmem %s1805_s22, 2048  ;;  %p1403_p1 = scmp.lt.s32.totalorder %s1805_s22, %s1401_s12 }
  0x1c   : > { %v376_v30 = vrot.slane %v354_v20, %v1633_v22  ;;  %v380_v31 = vrot.slane %v354_v20, %v379_v23  ;;  %v384_v32 = vrot.slane %v355_v21, %v1633_v22  ;;  %v388_v33 = vrot.slane %v355_v21, %v379_v23  ;;  %p1397_p12 = scmp.ne.s32.totalorder %s1805_s22, %s1396_s26  ;;  %p1404_p2 = scmp.lt.s32.totalorder %s1402_s14, %s1396_s26 }
  0x1d   : > { %1394 = vset.pattern.permute.xlu1 %v1477_v2  ;;  %1395 = vset.pattern.permute.xlu0 %v1477_v2  ;;  %v488_v34 = vrot.slane %v354_v20, %v1637_v24  ;;  %v492_v35 = vrot.slane %v354_v20, %v491_v25  ;;  %v496_v36 = vrot.slane %v355_v21, %v1637_v24 }
  0x1e   : > { %539 = vperm.xlu1 %1394, %v359_v5   ;;  %544 = vperm.xlu0 %1395, %v360_v6   ;;  %v500_v37 = vrot.slane %v355_v21, %v491_v25  ;;  %v448_v38 = vrot.slane %v428_v26, %v1629_v18  ;;  %v452_v39 = vrot.slane %v432_v27, %v1629_v18  ;;  %v594_v6 = vsub.s32 3, %v1623_v17  ;;  %v356_v17 = vld [vmem:[%s1862_s1] sm:$0xf]  ;;  %p1398_p13 = pnand %p1397_p12, %p1568_p4  ;;  %p1405_p3 = por %p1404_p2, %p1403_p1 }
  0x1f   : > { %v456_v40 = vrot.slane %v436_v28, %v1629_v18  ;;  %v460_v41 = vrot.slane %v440_v29, %v1629_v18  ;;  %v396_v44 = vrot.slane %v376_v30, %v1633_v22  ;;  %v400_v45 = vrot.slane %v380_v31, %v1633_v22 }
  0x20   : > { %v404_v46 = vrot.slane %v384_v32, %v1633_v22  ;;  %v408_v47 = vrot.slane %v388_v33, %v1633_v22  ;;  %v508_v48 = vrot.slane %v488_v34, %v1637_v24  ;;  %v512_v49 = vrot.slane %v492_v35, %v1637_v24  ;;  %p1399_p0 = pneg %p1398_p13 }
  0x21   : > { %v516_v50 = vrot.slane %v496_v36, %v1637_v24  ;;  %v520_v51 = vrot.slane %v500_v37, %v1637_v24 }
  0x22   : > { %618 = vperm.xlu1 %1394, %v612_v7   ;;  %628 = vperm.xlu0 %1395, %v614_v8   ;;  %p1406_p5 = pnand %p1405_p3, %p1399_p0 }
  0x26   : > { %623 = vperm.xlu1 %1394, %v613_v9   ;;  %901 = vperm.xlu0 %1395, %v895_v10  }
  0x2a   : > { %633 = vperm.xlu1 %1394, %v615_v11   ;;  %911 = vperm.xlu0 %1395, %v897_v12  }
  0x2e   : > { %906 = vperm.xlu1 %1394, %v896_v13  }
  0x32   : > { %916 = vperm.xlu1 %1394, %v898_v15  }
  0x8f   : > { %v419_v42 = vpop.permute.xlu1 %418  ;;  %v364_v43 = vpop.permute.xlu0 %363 }
  0x90   : > { %v461_v52 = vmul.f32 %v448_v38, %v419_v42  ;;  %v462_v53 = vmul.f32 %v452_v39, %v419_v42  ;;  %v463_v54 = vmul.f32 %v456_v40, %v419_v42  ;;  %v464_v55 = vmul.f32 %v460_v41, %v419_v42 }
  0x91   : > { %v409_v56 = vmul.f32 %v396_v44, %v364_v43  ;;  %v410_v57 = vmul.f32 %v400_v45, %v364_v43  ;;  %v411_v58 = vmul.f32 %v404_v46, %v364_v43  ;;  %v412_v59 = vmul.f32 %v408_v47, %v364_v43 }
  0x92   : > { %v583_v42 = vrot.slane %v356_v17, %v1633_v22  ;;  %v591_v43 = vrot.slane %v356_v17, %v1637_v24 }
  0x93   : > { %v423_v60 = vpop.permute.xlu1 %422  ;;  %v369_v61 = vpop.permute.xlu0 %368  ;;  %v469_v7 = vadd.f32 %v461_v52, %v409_v56  ;;  %v470_v8 = vadd.f32 %v462_v53, %v410_v57  ;;  %v471_v9 = vadd.f32 %v463_v54, %v411_v58  ;;  %v472_v10 = vadd.f32 %v464_v55, %v412_v59 }
  0x94   : > { %v465_v62 = vmul.f32 %v448_v38, %v423_v60  ;;  %v466_v63 = vmul.f32 %v452_v39, %v423_v60  ;;  %v467_v0 = vmul.f32 %v456_v40, %v423_v60  ;;  %v468_v1 = vmul.f32 %v460_v41, %v423_v60 }
  0x95   : > { %v413_v2 = vmul.f32 %v396_v44, %v369_v61  ;;  %v414_v3 = vmul.f32 %v400_v45, %v369_v61  ;;  %v415_v4 = vmul.f32 %v404_v46, %v369_v61  ;;  %v416_v5 = vmul.f32 %v408_v47, %v369_v61 }
  0x96   : > { %v587_v40 = vrot.slane %v356_v17, %v1629_v18  ;;  %v595_v41 = vrot.slane %v356_v17, %v594_v6 }
  0x97   : > { %v473_v11 = vadd.f32 %v465_v62, %v413_v2  ;;  %v474_v12 = vadd.f32 %v466_v63, %v414_v3  ;;  %v475_v13 = vadd.f32 %v467_v0, %v415_v4  ;;  %v476_v15 = vadd.f32 %v468_v1, %v416_v5 }
  0x98   : > { %v483_v16 = vpop.permute.xlu1 %482  ;;  %v479_v19 = vpop.permute.xlu0 %478 }
  0x99   : > { %v525_v20 = vmul.f32 %v508_v48, %v483_v16  ;;  %v526_v21 = vmul.f32 %v512_v49, %v483_v16  ;;  %v527_v23 = vmul.f32 %v516_v50, %v483_v16  ;;  %v528_v25 = vmul.f32 %v520_v51, %v483_v16  ;;  %v610_v16 = vld [vmem:[%s1865_s4 + $0x10] sm:$0xff] }
  0x9a   : > { %v521_v26 = vmul.f32 %v508_v48, %v479_v19  ;;  %v522_v27 = vmul.f32 %v512_v49, %v479_v19  ;;  %v523_v28 = vmul.f32 %v516_v50, %v479_v19  ;;  %v524_v29 = vmul.f32 %v520_v51, %v479_v19  ;;  %v611_v19 = vld [vmem:[%s1865_s4 + $0x18] sm:$0xff] }
  0x9b   : > { %v533_v30 = vadd.f32 %v525_v20, %v473_v11  ;;  %v534_v31 = vadd.f32 %v526_v21, %v474_v12  ;;  %v535_v32 = vadd.f32 %v527_v23, %v475_v13  ;;  %v536_v33 = vadd.f32 %v528_v25, %v476_v15  ;;  %v608_v13 = vld [vmem:[%s1865_s4] sm:$0xff]  ;;  %v609_v15 = vld [vmem:[%s1865_s4 + $0x8] sm:$0xff] }
  0x9c   : > { %v529_v34 = vadd.f32 %v521_v26, %v469_v7  ;;  %v530_v35 = vadd.f32 %v522_v27, %v470_v8  ;;  %v531_v36 = vadd.f32 %v523_v28, %v471_v9  ;;  %v532_v37 = vadd.f32 %v524_v29, %v472_v10 }
  0x9d   : > { %v540_v38 = vpop.permute.xlu1 %539  ;;  %v545_v39 = vpop.permute.xlu0 %544 }
  0x9e   : > { %v547_v44 = vadd.f32 %v540_v38, %v529_v34  ;;  %v548_v45 = vadd.f32 %v540_v38, %v530_v35  ;;  %v549_v46 = vadd.f32 %v540_v38, %v531_v36  ;;  %v550_v47 = vadd.f32 %v540_v38, %v532_v37 }
  0x9f   : > { %v551_v48 = vadd.f32 %v545_v39, %v533_v30  ;;  %v552_v49 = vadd.f32 %v545_v39, %v534_v31  ;;  %v553_v50 = vadd.f32 %v545_v39, %v535_v32  ;;  %v554_v51 = vadd.f32 %v545_v39, %v536_v33 }
  0xa0   : > { %v1259_v52 = vclamps-f32 %v548_v45, 1.0  ;;  %v1261_v53 = vclamps-f32 %v550_v47, 1.0  ;;  %v1258_v54 = vclamps-f32 %v547_v44, 1.0  ;;  %v1260_v55 = vclamps-f32 %v549_v46, 1.0 }
  0xa1   : > { %v1263_v56 = vclamps-f32 %v552_v49, 1.0  ;;  %v1265_v57 = vclamps-f32 %v554_v51, 1.0  ;;  %v1262_v18 = vclamps-f32 %v551_v48, 1.0  ;;  %v1264_v58 = vclamps-f32 %v553_v50, 1.0  ;;  %v619_v20 = vpop.permute.xlu1 %618 }
  0xa2   : > { %v572_v59 = vmul.f32 %v1259_v52, %v548_v45  ;;  %v574_v22 = vmul.f32 %v1261_v53, %v550_v47  ;;  %v571_v60 = vmul.f32 %v1258_v54, %v547_v44  ;;  %v573_v24 = vmul.f32 %v1260_v55, %v549_v46 }
  0xa3   : > { %v576_v61 = vmul.f32 %v1263_v56, %v552_v49  ;;  %v578_v62 = vmul.f32 %v1265_v57, %v554_v51  ;;  %v575_v63 = vmul.f32 %v1262_v18, %v551_v48  ;;  %v577_v0 = vmul.f32 %v1264_v58, %v553_v50 }
  0xa4   : > { %v601_v1 = vmul.f32 %v587_v40, %v572_v59  ;;  %v603_v2 = vmul.f32 %v595_v41, %v574_v22  ;;  %v600_v3 = vmul.f32 %v583_v42, %v571_v60  ;;  %v602_v4 = vmul.f32 %v591_v43, %v573_v24 }
  0xa5   : > { %v605_v5 = vmul.f32 %v587_v40, %v576_v61  ;;  %v607_v6 = vmul.f32 %v595_v41, %v578_v62  ;;  %v604_v7 = vmul.f32 %v583_v42, %v575_v63  ;;  %v606_v8 = vmul.f32 %v591_v43, %v577_v0  ;;  %v624_v30 = vpop.permute.xlu1 %623  ;;  %v629_v43 = vpop.permute.xlu0 %628 }
  0xa7   : > { %v1305_v9 = vpack.c.bf16 %v605_v5, %v601_v1  ;;  %v1309_v10 = vpack.c.bf16 %v607_v6, %v603_v2  ;;  %v1307_v11 = vpack.c.bf16 %v604_v7, %v600_v3  ;;  %v1311_v12 = vpack.c.bf16 %v606_v8, %v602_v4 }
  0xa9   : > { %1306 = vmatprep.subr.bf16.mxu0 %v1305_v9  ;;  %1310 = vmatprep.subr.bf16.mxu1 %v1309_v10  ;;  %v634_v61 = vpop.permute.xlu1 %633 }
  0xaa   : > { %1308 = vmatpush1.bf16.msra.mxu0 %v1307_v11  ;;  %1312 = vmatpush1.bf16.msra.mxu1 %v1311_v12 }
  0xad   : > { %1266 = vmatmul.mubr.msk.f32.vlgmr.msra.gmra.mrb[0].mxu0 %vm636_vm0, %v608_v13  ;;  %1270 = vmatmul.mubr.msk.f32.vlgmr.msra.gmra.mrb[0].mxu1 %vm636_vm0, %v608_v13 }
  0xae   : > { %719 = vmatprep.mubr.f32.mxu0 %v1479_v14  ;;  %808 = vmatprep.mubr.f32.mxu1 %v1479_v14 }
  0xb1   : > { %1267 = vmatmul.mubr.msk.f32.gmra.mrb[2].mxu0 %vm636_vm0, %v609_v15  ;;  %1271 = vmatmul.mubr.msk.f32.gmra.mrb[2].mxu1 %vm636_vm0, %v609_v15 }
  0xb2   : > { %725 = vmatprep.mubr.f32.mxu0 %v1479_v14  ;;  %814 = vmatprep.mubr.f32.mxu1 %v1479_v14 }
  0xb5   : > { %1268 = vmatmul.mubr.msk.f32.gmra.mrb[4].mxu0 %vm636_vm0, %v610_v16  ;;  %1272 = vmatmul.mubr.msk.f32.gmra.mrb[4].mxu1 %vm636_vm0, %v610_v16 }
  0xb6   : > { %731 = vmatprep.mubr.f32.mxu0 %v1479_v14  ;;  %820 = vmatprep.mubr.f32.mxu1 %v1479_v14 }
  0xb9   : > { %1269 = vmatmul.mubr.msk.f32.gmra.mrb[6].mxu0 %vm636_vm0, %v611_v19  ;;  %1273 = vmatmul.mubr.msk.f32.gmra.mrb[6].mxu1 %vm636_vm0, %v611_v19 }
  0xba   : > { %996 = vmatprep.mubr.f32.mxu0 %v1479_v14  ;;  %1085 = vmatprep.mubr.f32.mxu1 %v1479_v14 }
 0x180   : > { %v715_v21 = vpop.f32.mrb[0].mxu0  ;;  %v804_v23 = vpop.f32.mrb[0].mxu1 }
 0x181   : > { %v716_v25 = vadd.f32 %v715_v21, %v619_v20  ;;  %v805_v26 = vadd.f32 %v804_v23, %v619_v20  ;;  %v717_v27 = vpop.f32.mrb[1].mxu0  ;;  %v806_v28 = vpop.f32.mrb[1].mxu1 }
 0x182   : > { %v718_v29 = vadd.f32 %v717_v27, %v619_v20  ;;  %v807_v17 = vadd.f32 %v806_v28, %v619_v20 }
 0x183   : > { %v1274_v31 = vclamps-f32 %v716_v25, 1.0  ;;  %v1276_v32 = vclamps-f32 %v805_v26, 1.0 }
 0x184   : > { %v1275_v33 = vclamps-f32 %v718_v29, 1.0  ;;  %v1277_v34 = vclamps-f32 %v807_v17, 1.0  ;;  %v721_v35 = vpop.f32.mrb[2].mxu0  ;;  %v810_v36 = vpop.f32.mrb[2].mxu1 }
 0x185   : > { %v722_v37 = vadd.f32 %v721_v35, %v624_v30  ;;  %v811_v38 = vadd.f32 %v810_v36, %v624_v30  ;;  %v723_v39 = vpop.f32.mrb[3].mxu0  ;;  %v812_v40 = vpop.f32.mrb[3].mxu1  ;;  %v859_v44 = vmul.f32 %v1274_v31, %v716_v25  ;;  %v861_v45 = vmul.f32 %v1276_v32, %v805_v26 }
 0x186   : > { %v724_v41 = vadd.f32 %v723_v39, %v624_v30  ;;  %v813_v42 = vadd.f32 %v812_v40, %v624_v30  ;;  %v860_v48 = vmul.f32 %v1275_v33, %v718_v29  ;;  %v862_v49 = vmul.f32 %v1277_v34, %v807_v17 }
 0x187   : > { %v1278_v46 = vclamps-f32 %v722_v37, 1.0  ;;  %v1280_v47 = vclamps-f32 %v811_v38, 1.0  ;;  %v1697_v0 = vmul.f32 %v1274_v31, %v859_v44  ;;  %v1699_v1 = vmul.f32 %v1276_v32, %v861_v45 }
 0x188   : > { %v1279_v50 = vclamps-f32 %v724_v41, 1.0  ;;  %v1281_v51 = vclamps-f32 %v813_v42, 1.0  ;;  %v727_v52 = vpop.f32.mrb[4].mxu0  ;;  %v816_v53 = vpop.f32.mrb[4].mxu1  ;;  %v1701_v6 = vmul.f32 %v1275_v33, %v860_v48  ;;  %v1703_v7 = vmul.f32 %v1277_v34, %v862_v49 }
 0x189   : > { %v863_v54 = vmul.f32 %v1278_v46, %v722_v37  ;;  %v865_v55 = vmul.f32 %v1280_v47, %v811_v38  ;;  %v728_v56 = vadd.f32 %v727_v52, %v629_v43  ;;  %v817_v57 = vadd.f32 %v816_v53, %v629_v43  ;;  %v729_v18 = vpop.f32.mrb[5].mxu0  ;;  %v818_v58 = vpop.f32.mrb[5].mxu1  ;;  %v893_v52 = vld [vmem:[%s1867_s6 + $0x10] sm:$0xff]  ;;  %v894_v53 = vld [vmem:[%s1867_s6 + $0x18] sm:$0xff] }
 0x18a   : > { %v864_v59 = vmul.f32 %v1279_v50, %v724_v41  ;;  %v866_v22 = vmul.f32 %v1281_v51, %v813_v42  ;;  %v730_v60 = vadd.f32 %v729_v18, %v629_v43  ;;  %v819_v24 = vadd.f32 %v818_v58, %v629_v43 }
 0x18b   : > { %v1693_v62 = vmul.f32 %v1278_v46, %v863_v54  ;;  %v1695_v63 = vmul.f32 %v1280_v47, %v865_v55  ;;  %v1282_v12 = vclamps-f32 %v728_v56, 1.0  ;;  %v1284_v13 = vclamps-f32 %v817_v57, 1.0  ;;  %v902_v54 = vpop.permute.xlu0 %901 }
 0x18c   : > { %v1283_v2 = vclamps-f32 %v730_v60, 1.0  ;;  %v1285_v3 = vclamps-f32 %v819_v24, 1.0  ;;  %v733_v4 = vpop.f32.mrb[6].mxu0  ;;  %v822_v5 = vpop.f32.mrb[6].mxu1  ;;  %v1705_v8 = vmul.f32 %v1279_v50, %v864_v59  ;;  %v1707_v9 = vmul.f32 %v1281_v51, %v866_v22  ;;  %v891_v50 = vld [vmem:[%s1867_s6] sm:$0xff]  ;;  %v892_v51 = vld [vmem:[%s1867_s6 + $0x8] sm:$0xff] }
 0x18d   : > { %v735_v10 = vpop.f32.mrb[7].mxu0  ;;  %v824_v11 = vpop.f32.mrb[7].mxu1  ;;  %v734_v15 = vadd.f32 %v733_v4, %v634_v61  ;;  %v823_v16 = vadd.f32 %v822_v5, %v634_v61  ;;  %v1315_v19 = vpack.c.bf16 %v1693_v62, %v1697_v0  ;;  %v1323_v20 = vpack.c.bf16 %v1695_v63, %v1699_v1 }
 0x18e   : > { %v736_v21 = vadd.f32 %v735_v10, %v634_v61  ;;  %v825_v23 = vadd.f32 %v824_v11, %v634_v61  ;;  %v868_v25 = vmul.f32 %v1283_v2, %v730_v60  ;;  %v870_v26 = vmul.f32 %v1285_v3, %v819_v24  ;;  %v907_v60 = vpop.permute.xlu1 %906 }
 0x18f   : > { %v1286_v27 = vclamps-f32 %v734_v15, 1.0  ;;  %v1288_v28 = vclamps-f32 %v823_v16, 1.0  ;;  %v1313_v30 = vpack.c.bf16 %v1705_v8, %v1701_v6  ;;  %v1321_v31 = vpack.c.bf16 %v1707_v9, %v1703_v7 }
 0x190   : > { %v1287_v29 = vclamps-f32 %v736_v21, 1.0  ;;  %v1289_v17 = vclamps-f32 %v825_v23, 1.0  ;;  %v867_v32 = vmul.f32 %v1282_v12, %v728_v56  ;;  %v869_v33 = vmul.f32 %v1284_v13, %v817_v57 }
 0x191   : > { %v871_v34 = vmul.f32 %v1286_v27, %v734_v15  ;;  %v873_v35 = vmul.f32 %v1288_v28, %v823_v16  ;;  %1314 = vmatprep.subr.bf16.mxu0 %v1313_v30  ;;  %1322 = vmatprep.subr.bf16.mxu1 %v1321_v31  ;;  %v1721_v40 = vmul.f32 %v1283_v2, %v868_v25 }
 0x192   : > { %v872_v36 = vmul.f32 %v1287_v29, %v736_v21  ;;  %v874_v37 = vmul.f32 %v1289_v17, %v825_v23  ;;  %1316 = vmatpush1.bf16.msra.mxu0 %v1315_v19  ;;  %1324 = vmatpush1.bf16.msra.mxu1 %v1323_v20  ;;  %v1723_v41 = vmul.f32 %v1285_v3, %v870_v26 }
 0x193   : > { %v1717_v38 = vmul.f32 %v1286_v27, %v871_v34  ;;  %v1719_v39 = vmul.f32 %v1288_v28, %v873_v35  ;;  %v1729_v44 = vmul.f32 %v1282_v12, %v867_v32  ;;  %v1731_v45 = vmul.f32 %v1284_v13, %v869_v33  ;;  %v912_v12 = vpop.permute.xlu0 %911 }
 0x194   : > { %v1725_v42 = vmul.f32 %v1287_v29, %v872_v36  ;;  %v1727_v43 = vmul.f32 %v1289_v17, %v874_v37 }
 0x195   : > { %v1319_v48 = vpack.c.bf16 %v1717_v38, %v1729_v44  ;;  %v1327_v49 = vpack.c.bf16 %v1719_v39, %v1731_v45 }
 0x196   : > { %v1317_v46 = vpack.c.bf16 %v1725_v42, %v1721_v40  ;;  %v1325_v47 = vpack.c.bf16 %v1727_v43, %v1723_v41 }
 0x198   : > { %1318 = vmatprep.subr.bf16.mxu0 %v1317_v46  ;;  %1326 = vmatprep.subr.bf16.mxu1 %v1325_v47 }
 0x199   : > { %1320 = vmatpush1.bf16.msra.mxu0 %v1319_v48  ;;  %1328 = vmatpush1.bf16.msra.mxu1 %v1327_v49 }
 0x19c   : > { %1290 = vmatmul.mubr.msk.f32.vlgmr.msra.gmra.mrb[8].mxu0 %vm919_vm1, %v891_v50  ;;  %1294 = vmatmul.mubr.msk.f32.vlgmr.msra.gmra.mrb[8].mxu1 %vm919_vm1, %v891_v50 }
 0x19d   : > { %1002 = vmatprep.mubr.f32.mxu0 %v1479_v14  ;;  %1091 = vmatprep.mubr.f32.mxu1 %v1479_v14 }
 0x1a0   : > { %1291 = vmatmul.mubr.msk.f32.gmra.mrb[10].mxu0 %vm919_vm1, %v892_v51  ;;  %1295 = vmatmul.mubr.msk.f32.gmra.mrb[10].mxu1 %vm919_vm1, %v892_v51 }
 0x1a1   : > { %1008 = vmatprep.mubr.f32.mxu0 %v1479_v14  ;;  %1097 = vmatprep.mubr.f32.mxu1 %v1479_v14 }
 0x1a4   : > { %1292 = vmatmul.mubr.msk.f32.gmra.mrb[12].mxu0 %vm919_vm1, %v893_v52  ;;  %1296 = vmatmul.mubr.msk.f32.gmra.mrb[12].mxu1 %vm919_vm1, %v893_v52 }
 0x1a5   : > { %1014 = vmatprep.mubr.f32.mxu0 %v1479_v14  ;;  %1103 = vmatprep.mubr.f32.mxu1 %v1479_v14 }
 0x1a8   : > { %1293 = vmatmul.mubr.msk.f32.gmra.mrb[14].mxu0 %vm919_vm1, %v894_v53  ;;  %1297 = vmatmul.mubr.msk.f32.gmra.mrb[14].mxu1 %vm919_vm1, %v894_v53 }
 0x26f   : > { %v998_v55 = vpop.f32.mrb[8].mxu0  ;;  %v1087_v56 = vpop.f32.mrb[8].mxu1 }
 0x270   : > { %v999_v57 = vadd.f32 %v998_v55, %v902_v54  ;;  %v1088_v18 = vadd.f32 %v1087_v56, %v902_v54  ;;  %v1000_v58 = vpop.f32.mrb[9].mxu0  ;;  %v1089_v59 = vpop.f32.mrb[9].mxu1 }
 0x271   : > { %v1001_v22 = vadd.f32 %v1000_v58, %v902_v54  ;;  %v1090_v14 = vadd.f32 %v1089_v59, %v902_v54 }
 0x272   : > { %v1110_v24 = vmul.f32 %v999_v57, %v1697_v0  ;;  %v1112_v61 = vmul.f32 %v1088_v18, %v1699_v1 }
 0x273   : > { %v1111_v2 = vmul.f32 %v1001_v22, %v1701_v6  ;;  %v1113_v3 = vmul.f32 %v1090_v14, %v1703_v7  ;;  %v1004_v4 = vpop.f32.mrb[10].mxu0  ;;  %v1093_v5 = vpop.f32.mrb[10].mxu1 }
 0x274   : > { %1126 = vst [vmem:[%s1774_s20] sm:$0xff] %v1110_v24  ;;  %1128 = vst [vmem:[%s1774_s20 + $0x10] sm:$0xff] %v1112_v61  ;;  %v1005_v10 = vadd.f32 %v1004_v4, %v907_v60  ;;  %v1094_v0 = vadd.f32 %v1093_v5, %v907_v60  ;;  %v1006_v11 = vpop.f32.mrb[11].mxu0  ;;  %v1095_v1 = vpop.f32.mrb[11].mxu1 }
 0x275   : > { %1127 = vst [vmem:[%s1774_s20 + $0x8] sm:$0xff] %v1111_v2  ;;  %1129 = vst [vmem:[%s1774_s20 + $0x18] sm:$0xff] %v1113_v3  ;;  %v1007_v6 = vadd.f32 %v1006_v11, %v907_v60  ;;  %v1096_v7 = vadd.f32 %v1095_v1, %v907_v60 }
 0x276   : > { %v1114_v13 = vmul.f32 %v1005_v10, %v1693_v62  ;;  %v1116_v15 = vmul.f32 %v1094_v0, %v1695_v63 }
 0x277   : > { %v1115_v16 = vmul.f32 %v1007_v6, %v1705_v8  ;;  %v1117_v19 = vmul.f32 %v1096_v7, %v1707_v9  ;;  %v1010_v20 = vpop.f32.mrb[12].mxu0  ;;  %v1099_v21 = vpop.f32.mrb[12].mxu1 }
 0x278   : > { %1130 = vst [vmem:[%s1774_s20 + $0x20] sm:$0xff] %v1114_v13  ;;  %1132 = vst [vmem:[%s1774_s20 + $0x30] sm:$0xff] %v1116_v15  ;;  %v1011_v23 = vadd.f32 %v1010_v20, %v912_v12  ;;  %v1100_v25 = vadd.f32 %v1099_v21, %v912_v12  ;;  %v1012_v26 = vpop.f32.mrb[13].mxu0  ;;  %v1101_v27 = vpop.f32.mrb[13].mxu1 }
 0x279   : > { %1131 = vst [vmem:[%s1774_s20 + $0x28] sm:$0xff] %v1115_v16  ;;  %1133 = vst [vmem:[%s1774_s20 + $0x38] sm:$0xff] %v1117_v19  ;;  %v1013_v62 = vadd.f32 %v1012_v26, %v912_v12  ;;  %v1102_v63 = vadd.f32 %v1101_v27, %v912_v12  ;;  %v917_v8 = vpop.permute.xlu1 %916 }
 0x27a   : > { %v1118_v9 = vmul.f32 %v1011_v23, %v1729_v44  ;;  %v1120_v28 = vmul.f32 %v1100_v25, %v1731_v45 }
 0x27b   : > { %v1119_v29 = vmul.f32 %v1013_v62, %v1721_v40  ;;  %v1121_v17 = vmul.f32 %v1102_v63, %v1723_v41  ;;  %v1016_v30 = vpop.f32.mrb[14].mxu0  ;;  %v1105_v31 = vpop.f32.mrb[14].mxu1 }
 0x27c   : > { %1134 = vst [vmem:[%s1774_s20 + $0x40] sm:$0xff] %v1118_v9  ;;  %1136 = vst [vmem:[%s1774_s20 + $0x50] sm:$0xff] %v1120_v28  ;;  %v1017_v32 = vadd.f32 %v1016_v30, %v917_v8  ;;  %v1106_v33 = vadd.f32 %v1105_v31, %v917_v8  ;;  %v1018_v34 = vpop.f32.mrb[15].mxu0  ;;  %v1107_v35 = vpop.f32.mrb[15].mxu1 }
 0x27d   : > { %1135 = vst [vmem:[%s1774_s20 + $0x48] sm:$0xff] %v1119_v29  ;;  %1137 = vst [vmem:[%s1774_s20 + $0x58] sm:$0xff] %v1121_v17  ;;  %v1019_v36 = vadd.f32 %v1018_v34, %v917_v8  ;;  %v1108_v37 = vadd.f32 %v1107_v35, %v917_v8 }
 0x27e   : > { %v1122_v40 = vmul.f32 %v1017_v32, %v1717_v38  ;;  %v1124_v41 = vmul.f32 %v1106_v33, %v1719_v39 }
 0x27f   : > { %v1123_v44 = vmul.f32 %v1019_v36, %v1725_v42  ;;  %v1125_v45 = vmul.f32 %v1108_v37, %v1727_v43 }
 0x280   : > { %1138 = vst [vmem:[%s1774_s20 + $0x60] sm:$0xff] %v1122_v40  ;;  %1140 = vst [vmem:[%s1774_s20 + $0x70] sm:$0xff] %v1124_v41 }
 0x281   : > { %1139 = vst [vmem:[%s1774_s20 + $0x68] sm:$0xff] %v1123_v44  ;;  %1141 = vst [vmem:[%s1774_s20 + $0x78] sm:$0xff] %v1125_v45 }
 0x282   : > { %1409 = shalt.err (!%p1406_p5)
}
 0x283   : > { %s1410_s16 = scalar_lea.hbm %s1803_s24, 2048  ;;  %s1414_s21 = scalar_lea.hbm %s1869_s8, 4096 }
 0x284   : > { %p1411_p6 = scmp.ne.s32.totalorder %s1803_s24, %s1410_s16  ;;  %p1415_p10 = scmp.lt.u32.totalorder %s1803_s24, %s1869_s8 }
 0x285   : > { %p1416_p11 = scmp.lt.u32.totalorder %s1414_s21, %s1410_s16  ;;  %p1418_p13 = scmp.lt.u32.totalorder %s1410_s16, %s1803_s24 }
 0x286   : > { %p1412_p7 = pnand %p1411_p6, %p1568_p4 }
 0x287   : > { %p1417_p12 = por %p1416_p11, %p1415_p10 }
 0x288   : > { %p1413_p9 = pneg %p1412_p7 }
 0x289   : > { %p1419_p0 = por %p1418_p13, %p1417_p12 }
 0x28b   : > { %p1420_p1 = pnand %p1419_p0, %p1413_p9 }
 0x28d   : > { %1423 = shalt.err (!%p1420_p1)
}
 0x28e   : > { %s1481_s26 = smov 512   ;;  %s1482_s11 = smov 32  }
 0x28f   : > { %1329 = dma.vmem_to_hbm [thread:$0]  (%p1568_p4), %s1805_s22, 2048, %s1803_s24, %s1815_s25, %s1481_s26, %s1481_s26, %s1482_s11  }
 0x290 PF: > { %p1335_p2 = scmp.ge.s32.totalorder %s1474_s10, 2  ;;  %s1173_s12 = sand.u32 1, %s1454_s27  }
 0x291   : > { %s1174_s14 = scalar_lea.sflag [#allocation3], %s1173_s12 }
 0x292   : > { %p1332_p3 = pnand %p1335_p2, %p1575_p8 }
 0x294   : > { %1449 = dma.done.wait (!%p1332_p3), %s1174_s14, 2048  }
 0x295   : > { %1451 = vsyncadd (!%p1332_p3), %s1174_s14, 4294965248  ;;  %s21_s10 = sadd.s32 1, %s1474_s10   ;;  %s1872_s27 = smov %s1458_s28 }
 0x296   : > { %p18_p5 = scmp.ge.s32.totalorder %s21_s10, 4   ;;  %s1873_s28 = smov %s1462_s29 }
 0x297   : > { %s1874_s29 = smov %s1581_s18  ;;  %s1875_s30 = smov %s1470_s9 }
 0x298   : > { %s1876_s9 = smov %s1878_s13  ;;  %20 = sbr.rel (!%p18_p5) target bundleno = 4 (0x4), region = 90 }
 0x29f   :  { %1179 = vsyncpa [#allocation3], 1 }
 0x2a0   :  { %1181 = vsyncpa [#allocation3 + $0x1], 1 }

</bundles_post_ra>
